<compile_context>
chip_gen: v7x
topology: tpu7x:2x2x1
jax: 0.10.0
libtpu: 0.0.40
codegen_flags: <defaults>
</compile_context>

<pallas_src>
import functools
import math

import jax
import jax.numpy as jnp
from jax import lax
from jax.experimental import pallas as pl
from jax.experimental.pallas import tpu as pltpu
import numpy as np


# ----------------------------------------------------------------------------
# Small helpers (used inside the kernel)
# ----------------------------------------------------------------------------
def _relu6(x):
    return jnp.minimum(jnp.maximum(x, 0.0), 6.0)


def _shift_flat(a, d, fill):
    """Shift a (C, L) array along the lane (flattened spatial) axis.

    d > 0: result[:, j] = a[:, j - d]  (shift right / down), fill on the left.
    d < 0: result[:, j] = a[:, j + |d|] (shift left / up),   fill on the right.
    """
    C, L = a.shape
    if d > 0:
        filler = jnp.full((C, d), fill, a.dtype)
        return jnp.concatenate([filler, a[:, : L - d]], axis=1)
    dd = -d
    filler = jnp.full((C, dd), fill, a.dtype)
    return jnp.concatenate([a[:, dd:], filler], axis=1)


def _maxpool_flat(a, w_idx, H, W, pad):
    """k x k, stride-1, pad=k//2 max-pool (PyTorch semantics: padding is
    ignored, i.e. -inf) computed separably on the flattened (C, H*W) layout.

    W-direction shifts move along lanes inside a row; a mask on the intra-row
    index prevents cross-row contamination.  H-direction shifts move whole
    rows (shift by d*W), so only the end-fill is needed.
    """
    ninf = -jnp.inf
    # ---- 1-D running max along W
    r = a
    for d in range(1, pad + 1):
        left = jnp.where(w_idx < W - d, _shift_flat(a, -d, ninf), ninf)
        right = jnp.where(w_idx >= d, _shift_flat(a, d, ninf), ninf)
        r = jnp.maximum(r, jnp.maximum(left, right))
    # ---- 1-D running max along H
    out = r
    for d in range(1, pad + 1):
        out = jnp.maximum(out, jnp.maximum(_shift_flat(r, -d * W, ninf),
                                           _shift_flat(r, d * W, ninf)))
    return out


# ----------------------------------------------------------------------------
# Fused SPPF kernel: cv1 + 3x maxpool + (concat fused into) cv2
#
# Grid: (N, C_tiles).  Per step:
#   x_ref  : (Cin, HW)      image n (resident across the channel-tile axis)
#   w1_ref : (TC, Cin)      cv1 weight rows for this channel tile
#   s1/b1  : (TC, 1)        folded BN of cv1 for this tile
#   w2_ref : (4, Cout, TC)  cv2 weight columns for [x, y1, y2, y3] x this tile
#   s2/b2  : (Cout, 1)      folded BN of cv2
#   o_ref  : (Cout, HW)     output for image n (written on the last tile)
#   acc_ref: VMEM (Cout, HW) f32 accumulator (partial cv2 contraction)
# ----------------------------------------------------------------------------
def sppf_fused_kernel(x_ref, w1_ref, s1_ref, b1_ref, w2_ref, s2_ref, b2_ref,
                      o_ref, acc_ref, *, H, W, pad):
    c = pl.program_id(1)

    @pl.when(c == 0)
    def _init():
        acc_ref[...] = jnp.zeros_like(acc_ref)

    # ---- cv1: 1x1 conv as matmul + folded BN + ReLU6 (this channel tile)
    t = jnp.dot(w1_ref[...], x_ref[...], preferred_element_type=jnp.float32)
    t = _relu6(t * s1_ref[...] + b1_ref[...])              # (TC, HW) f32

    # ---- 3 chained separable max-pools (f32 elementwise; per-channel => no halo)
    w_idx = lax.broadcasted_iota(jnp.int32, t.shape, 1) % W   # hoisted once
    y1 = _maxpool_flat(t, w_idx, H, W, pad)
    y2 = _maxpool_flat(y1, w_idx, H, W, pad)
    y3 = _maxpool_flat(y2, w_idx, H, W, pad)

    # ---- cv2: channel-concat fused as 4 accumulated matmuls
    w2 = w2_ref[...]                                        # (4, Cout, TC)
    cdt = w2.dtype

    def cdot(wj, v):
        return jnp.dot(wj, v.astype(cdt), preferred_element_type=jnp.float32)

    acc_ref[...] += (cdot(w2[0], t) + cdot(w2[1], y1)
                     + cdot(w2[2], y2) + cdot(w2[3], y3))

    # ---- finalize: folded BN + ReLU6, write the (Cout, HW) output block
    @pl.when(c == pl.num_programs(1) - 1)
    def _fin():
        o_ref[...] = _relu6(acc_ref[...] * s2_ref[...]
                            + b2_ref[...]).astype(o_ref.dtype)


# ----------------------------------------------------------------------------
# Wrapper: layout prep (free reshapes only) + pallas_call
# ----------------------------------------------------------------------------
def _pick_channel_tile(c_):
    """Full channel dim if small; otherwise a 128-multiple divisor (keeps the
    per-step VMEM footprint bounded, which matters on v7x's 64 MiB)."""
    if c_ <= 256:
        return c_
    for t in (256, 128):
        if c_ % t == 0:
            return t
    return c_


def sppf_forward(x_nchw, params, k=5, matmul_dtype=jnp.float32,
                 channel_tile=None):
    w1, s1, b1, w2, s2, b2 = params
    N, Cin, H, W = x_nchw.shape
    HW = H * W
    pad = k // 2
    C_ = w1.shape[0]
    Cout = w2.shape[0]
    assert w1.shape == (C_, Cin) and w2.shape == (Cout, 4 * C_)

    TC = channel_tile if channel_tile is not None else _pick_channel_tile(C_)
    assert C_ % TC == 0
    CT = C_ // TC

    # NCHW kept end-to-end: only free reshapes, no transposes through HBM.
    # Lane dim of the big arrays is HW (lane-dense: 256 here; >=128 ideal).
    x2 = x_nchw.reshape(N, Cin, HW).astype(matmul_dtype)
    w1k = w1.astype(matmul_dtype)                                   # (C_, Cin)
    # cv2 weight (Cout, 4*C_) -> (4, Cout, C_): one (Cout, C_) block per source.
    w2k = jnp.transpose(w2.reshape(Cout, 4, C_), (1, 0, 2)).astype(matmul_dtype)
    s1k = s1.reshape(C_, 1).astype(jnp.float32)
    b1k = b1.reshape(C_, 1).astype(jnp.float32)
    s2k = s2.reshape(Cout, 1).astype(jnp.float32)
    b2k = b2.reshape(Cout, 1).astype(jnp.float32)

    kernel = functools.partial(sppf_fused_kernel, H=H, W=W, pad=pad)

    out2 = pl.pallas_call(
        kernel,
        out_shape=jax.ShapeDtypeStruct((N, Cout, HW), jnp.float32),
        grid_spec=pltpu.PrefetchScalarGridSpec(
            num_scalar_prefetch=0,
            grid=(N, CT),                       # reduction (channel tiles) last
            in_specs=[
                # x stays resident across the channel-tile axis (same block idx)
                pl.BlockSpec((None, Cin, HW), lambda n, c: (n, 0, 0)),
                pl.BlockSpec((TC, Cin), lambda n, c: (c, 0)),
                pl.BlockSpec((TC, 1), lambda n, c: (c, 0)),
                pl.BlockSpec((TC, 1), lambda n, c: (c, 0)),
                pl.BlockSpec((4, Cout, TC), lambda n, c: (0, 0, c)),
                pl.BlockSpec((Cout, 1), lambda n, c: (0, 0)),
                pl.BlockSpec((Cout, 1), lambda n, c: (0, 0)),
            ],
            out_specs=pl.BlockSpec((None, Cout, HW), lambda n, c: (n, 0, 0)),
            scratch_shapes=[pltpu.VMEM((Cout, HW), jnp.float32)],
        ),
        compiler_params=pltpu.CompilerParams(
            dimension_semantics=("parallel", "arbitrary")),
    )(x2, w1k, s1k, b1k, w2k, s2k, b2k)

    return out2.reshape(N, Cout, H, W)


# ----------------------------------------------------------------------------
# Pure-JAX reference (NCHW, f32) for the correctness check
# ----------------------------------------------------------------------------
def sppf_ref(x, params, k=5):
    w1, s1, b1, w2, s2, b2 = params
    p = k // 2

    def conv_bn_act(a, w, s, b):
        y = jnp.einsum('oc,nchw->nohw', w, a)
        y = y * s[None, :, None, None] + b[None, :, None, None]
        return jnp.clip(y, 0.0, 6.0)

    def mp(a):
        return lax.reduce_window(a, -jnp.inf, lax.max,
                                 (1, 1, k, k), (1, 1, 1, 1),
                                 ((0, 0), (0, 0), (p, p), (p, p)))

    t = conv_bn_act(x, w1, s1, b1)
    y1 = mp(t); y2 = mp(y1); y3 = mp(y2)
    cat = jnp.concatenate([t, y1, y2, y3], axis=1)
    return conv_bn_act(cat, w2, s2, b2)


# ----------------------------------------------------------------------------
# Deterministic parameter init (conv no-bias + BN folded to scale/bias)
# Weights stored in torch layout: (Cout, Cin) for the 1x1 convs.
# ----------------------------------------------------------------------------
def make_params(key, c_in):
    c_ = c_in // 2
    k1, k2, k3, k4 = jax.random.split(key, 4)

    def bn_fold(key, c):
        kg, kb, km, kv = jax.random.split(key, 4)
        gamma = jax.random.uniform(kg, (c,), minval=0.5, maxval=1.5)
        beta = jax.random.uniform(kb, (c,), minval=-0.1, maxval=0.1)
        mean = jax.random.uniform(km, (c,), minval=-0.1, maxval=0.1)
        var = jax.random.uniform(kv, (c,), minval=0.5, maxval=1.5)
        eps = 1e-3  # Model.init_params sets bn.eps = 0.001
        s = gamma / jnp.sqrt(var + eps)
        b = beta - mean * s
        return s.astype(jnp.float32), b.astype(jnp.float32)

    w1 = (jax.random.normal(k1, (c_, c_in)) / math.sqrt(c_in)).astype(jnp.float32)
    w2 = (jax.random.normal(k2, (c_in, 4 * c_)) / math.sqrt(4 * c_)).astype(jnp.float32)
    s1, b1 = bn_fold(k3, c_)
    s2, b2 = bn_fold(k4, c_in)
    return (w1, s1, b1, w2, s2, b2)


if __name__ == "__main__":
    N, C_IN, H, W = 2, 4, 16, 16
    K = 5

    key = jax.random.PRNGKey(0)
    kx, kp = jax.random.split(key)
    x = jax.random.normal(kx, (N, C_IN, H, W), dtype=jnp.float32)   # NCHW input
    params = make_params(kp, C_IN)

    ref = jax.block_until_ready(sppf_ref(x, params, k=K))

    # f32 matmul path: tight check against the pure-JAX reference.
    out = jax.block_until_ready(sppf_forward(x, params, k=K))
    assert out.shape == (N, C_IN, H, W), out.shape
    np.testing.assert_allclose(np.asarray(out), np.asarray(ref),
                               rtol=1e-4, atol=1e-4)

    # bf16 matmul path (f32 accumulation / elementwise): loose smoke check.
    out_bf = jax.block_until_ready(
        sppf_forward(x, params, k=K, matmul_dtype=jnp.bfloat16))
    diff = np.abs(np.asarray(out_bf) - np.asarray(ref))
    assert np.isfinite(np.asarray(out_bf)).all()
    assert float(diff.max()) < 0.5 and float(diff.mean()) < 0.05, \
        (float(diff.max()), float(diff.mean()))

    print("KERNEL_OK")
</pallas_src>

<mosaic_0001>
module attributes {stable_mosaic.version = 11 : i64} {
  func.func @sppf_fused_kernel(%arg0: i32, %arg1: i32, %arg2: memref<1x4x256xf32, #tpu.memory_space<vmem>>, %arg3: memref<2x4xf32, #tpu.memory_space<vmem>>, %arg4: memref<2x1xf32, #tpu.memory_space<vmem>>, %arg5: memref<2x1xf32, #tpu.memory_space<vmem>>, %arg6: memref<4x4x2xf32, #tpu.memory_space<vmem>>, %arg7: memref<4x1xf32, #tpu.memory_space<vmem>>, %arg8: memref<4x1xf32, #tpu.memory_space<vmem>>, %arg9: memref<1x4x256xf32, #tpu.memory_space<vmem>>, %arg10: memref<4x256xf32, #tpu.memory_space<vmem>>) attributes {dimension_semantics = [#tpu.dimension_semantics<parallel>, #tpu.dimension_semantics<arbitrary>], iteration_bounds = array<i64: 2, 1>, scalar_prefetch = 0 : i64, scratch_operands = 1 : i64, tpu.core_type = #tpu.core_type<tc>, window_params = [{transform_indices = @transform_0, window_bounds = array<i64: 1, 4, 256>}, {transform_indices = @transform_1, window_bounds = array<i64: 2, 4>}, {transform_indices = @transform_2, window_bounds = array<i64: 2, 1>}, {transform_indices = @transform_3, window_bounds = array<i64: 2, 1>}, {transform_indices = @transform_4, window_bounds = array<i64: 4, 4, 2>}, {pipeline_mode = #tpu.pipeline_mode<synchronous>, transform_indices = @transform_5, window_bounds = array<i64: 4, 1>}, {pipeline_mode = #tpu.pipeline_mode<synchronous>, transform_indices = @transform_6, window_bounds = array<i64: 4, 1>}, {transform_indices = @transform_7, window_bounds = array<i64: 1, 4, 256>}]} {
    %c0_i32 = arith.constant 0 : i32
    %0 = arith.cmpi eq, %arg1, %c0_i32 : i32
    %1 = arith.extui %0 : i1 to i32
    %c0_i32_0 = arith.constant 0 : i32
    %2 = arith.cmpi ne, %1, %c0_i32_0 : i32
    scf.if %2 {
      %cst_73 = arith.constant 0.000000e+00 : f32
      %200 = vector.broadcast %cst_73 : f32 to vector<4x256xf32>
      %c0_74 = arith.constant 0 : index
      %c0_75 = arith.constant 0 : index
      %201 = vector.load %arg10[%c0_74, %c0_75] : memref<4x256xf32, #tpu.memory_space<vmem>>, vector<4x256xf32>
      tpu.vector_store %arg10[%c0_74, %c0_75], %200 {strides = array<i32>} : memref<4x256xf32, #tpu.memory_space<vmem>>, vector<4x256xf32>,
    } else {
    }
    %c0 = arith.constant 0 : index
    %c0_1 = arith.constant 0 : index
    %3 = vector.load %arg3[%c0, %c0_1] : memref<2x4xf32, #tpu.memory_space<vmem>>, vector<2x4xf32>
    %c0_2 = arith.constant 0 : index
    %c0_3 = arith.constant 0 : index
    %c0_4 = arith.constant 0 : index
    %4 = vector.load %arg2[%c0_2, %c0_3, %c0_4] : memref<1x4x256xf32, #tpu.memory_space<vmem>>, vector<1x4x256xf32>
    %5 = vector.shape_cast %4 : vector<1x4x256xf32> to vector<4x256xf32>
    %cst = arith.constant dense<0.000000e+00> : vector<2x256xf32>
    %6 = tpu.matmul %3, %5, %cst {dimension_numbers = #tpu.dot_dimension_numbers<[1], [0], [0], [1], [0, 0, 1, 1], [], []>} : vector<2x4xf32>, vector<4x256xf32>, vector<2x256xf32> -> vector<2x256xf32>
    %c0_5 = arith.constant 0 : index
    %c0_6 = arith.constant 0 : index
    %7 = vector.load %arg4[%c0_5, %c0_6] : memref<2x1xf32, #tpu.memory_space<vmem>>, vector<2x1xf32>
    %8 = vector.broadcast %7 : vector<2x1xf32> to vector<2x256xf32>
    %9 = arith.mulf %6, %8 : vector<2x256xf32>
    %c0_7 = arith.constant 0 : index
    %c0_8 = arith.constant 0 : index
    %10 = vector.load %arg5[%c0_7, %c0_8] : memref<2x1xf32, #tpu.memory_space<vmem>>, vector<2x1xf32>
    %11 = vector.broadcast %10 : vector<2x1xf32> to vector<2x256xf32>
    %12 = arith.addf %9, %11 : vector<2x256xf32>
    %cst_9 = arith.constant 0.000000e+00 : f32
    %13 = vector.broadcast %cst_9 : f32 to vector<2x256xf32>
    %14 = arith.maximumf %12, %13 : vector<2x256xf32>
    %cst_10 = arith.constant 6.000000e+00 : f32
    %15 = vector.broadcast %cst_10 : f32 to vector<2x256xf32>
    %16 = arith.minimumf %14, %15 : vector<2x256xf32>
    %17 = tpu.iota {dimensions = array<i32: 1>} : vector<2x256xi32>
    %c16_i32 = arith.constant 16 : i32
    %c0_i32_11 = arith.constant 0 : i32
    %18 = arith.cmpi eq, %c16_i32, %c0_i32_11 : i32
    %c1_i32 = arith.constant 1 : i32
    %19 = arith.select %18, %c1_i32, %c16_i32 : i32
    %20 = vector.broadcast %19 : i32 to vector<2x256xi32>
    %21 = arith.remsi %17, %20 : vector<2x256xi32>
    %c0_i32_12 = arith.constant 0 : i32
    %22 = vector.broadcast %c0_i32_12 : i32 to vector<2x256xi32>
    %23 = arith.cmpi ne, %21, %22 : vector<2x256xi32>
    %c0_i32_13 = arith.constant 0 : i32
    %24 = vector.broadcast %c0_i32_13 : i32 to vector<2x256xi32>
    %25 = arith.cmpi slt, %21, %24 : vector<2x256xi32>
    %c0_i32_14 = arith.constant 0 : i32
    %26 = arith.cmpi slt, %19, %c0_i32_14 : i32
    %27 = vector.broadcast %26 : i1 to vector<2x256xi1>
    %28 = vector.broadcast %27 : vector<2x256xi1> to vector<2x256xi1>
    %29 = arith.xori %25, %28 : vector<2x256xi1>
    %30 = arith.andi %29, %23 : vector<2x256xi1>
    %31 = vector.broadcast %19 : i32 to vector<2x256xi32>
    %32 = arith.addi %21, %31 : vector<2x256xi32>
    %33 = arith.select %30, %32, %21 : vector<2x256xi1>, vector<2x256xi32>
    %c15_i32 = arith.constant 15 : i32
    %34 = vector.broadcast %c15_i32 : i32 to vector<2x256xi32>
    %35 = arith.cmpi slt, %33, %34 : vector<2x256xi32>
    %cst_15 = arith.constant 0xFF800000 : f32
    %36 = vector.broadcast %cst_15 : f32 to vector<2x1xf32>
    %37 = vector.extract_strided_slice %16 {offsets = [0, 1], sizes = [2, 255], strides = [1, 1]} : vector<2x256xf32> to vector<2x255xf32>
    %38 = tpu.concatenate %37, %36 in 1 : vector<2x255xf32>, vector<2x1xf32> -> vector<2x256xf32>
    %cst_16 = arith.constant 0xFF800000 : f32
    %39 = vector.broadcast %cst_16 : f32 to vector<2x256xf32>
    %40 = arith.select %35, %38, %39 : vector<2x256xi1>, vector<2x256xf32>
    %c1_i32_17 = arith.constant 1 : i32
    %41 = vector.broadcast %c1_i32_17 : i32 to vector<2x256xi32>
    %42 = arith.cmpi sge, %33, %41 : vector<2x256xi32>
    %cst_18 = arith.constant 0xFF800000 : f32
    %43 = vector.broadcast %cst_18 : f32 to vector<2x1xf32>
    %44 = vector.extract_strided_slice %16 {offsets = [0, 0], sizes = [2, 255], strides = [1, 1]} : vector<2x256xf32> to vector<2x255xf32>
    %45 = tpu.concatenate %43, %44 in 1 : vector<2x1xf32>, vector<2x255xf32> -> vector<2x256xf32>
    %cst_19 = arith.constant 0xFF800000 : f32
    %46 = vector.broadcast %cst_19 : f32 to vector<2x256xf32>
    %47 = arith.select %42, %45, %46 : vector<2x256xi1>, vector<2x256xf32>
    %48 = arith.maximumf %40, %47 : vector<2x256xf32>
    %49 = arith.maximumf %16, %48 : vector<2x256xf32>
    %c14_i32 = arith.constant 14 : i32
    %50 = vector.broadcast %c14_i32 : i32 to vector<2x256xi32>
    %51 = arith.cmpi slt, %33, %50 : vector<2x256xi32>
    %cst_20 = arith.constant 0xFF800000 : f32
    %52 = vector.broadcast %cst_20 : f32 to vector<2x2xf32>
    %53 = vector.extract_strided_slice %16 {offsets = [0, 2], sizes = [2, 254], strides = [1, 1]} : vector<2x256xf32> to vector<2x254xf32>
    %54 = tpu.concatenate %53, %52 in 1 : vector<2x254xf32>, vector<2x2xf32> -> vector<2x256xf32>
    %cst_21 = arith.constant 0xFF800000 : f32
    %55 = vector.broadcast %cst_21 : f32 to vector<2x256xf32>
    %56 = arith.select %51, %54, %55 : vector<2x256xi1>, vector<2x256xf32>
    %c2_i32 = arith.constant 2 : i32
    %57 = vector.broadcast %c2_i32 : i32 to vector<2x256xi32>
    %58 = arith.cmpi sge, %33, %57 : vector<2x256xi32>
    %cst_22 = arith.constant 0xFF800000 : f32
    %59 = vector.broadcast %cst_22 : f32 to vector<2x2xf32>
    %60 = vector.extract_strided_slice %16 {offsets = [0, 0], sizes = [2, 254], strides = [1, 1]} : vector<2x256xf32> to vector<2x254xf32>
    %61 = tpu.concatenate %59, %60 in 1 : vector<2x2xf32>, vector<2x254xf32> -> vector<2x256xf32>
    %cst_23 = arith.constant 0xFF800000 : f32
    %62 = vector.broadcast %cst_23 : f32 to vector<2x256xf32>
    %63 = arith.select %58, %61, %62 : vector<2x256xi1>, vector<2x256xf32>
    %64 = arith.maximumf %56, %63 : vector<2x256xf32>
    %65 = arith.maximumf %49, %64 : vector<2x256xf32>
    %cst_24 = arith.constant 0xFF800000 : f32
    %66 = vector.broadcast %cst_24 : f32 to vector<2x16xf32>
    %67 = vector.extract_strided_slice %65 {offsets = [0, 16], sizes = [2, 240], strides = [1, 1]} : vector<2x256xf32> to vector<2x240xf32>
    %68 = tpu.concatenate %67, %66 in 1 : vector<2x240xf32>, vector<2x16xf32> -> vector<2x256xf32>
    %cst_25 = arith.constant 0xFF800000 : f32
    %69 = vector.broadcast %cst_25 : f32 to vector<2x16xf32>
    %70 = vector.extract_strided_slice %65 {offsets = [0, 0], sizes = [2, 240], strides = [1, 1]} : vector<2x256xf32> to vector<2x240xf32>
    %71 = tpu.concatenate %69, %70 in 1 : vector<2x16xf32>, vector<2x240xf32> -> vector<2x256xf32>
    %72 = arith.maximumf %68, %71 : vector<2x256xf32>
    %73 = arith.maximumf %65, %72 : vector<2x256xf32>
    %cst_26 = arith.constant 0xFF800000 : f32
    %74 = vector.broadcast %cst_26 : f32 to vector<2x32xf32>
    %75 = vector.extract_strided_slice %65 {offsets = [0, 32], sizes = [2, 224], strides = [1, 1]} : vector<2x256xf32> to vector<2x224xf32>
    %76 = tpu.concatenate %75, %74 in 1 : vector<2x224xf32>, vector<2x32xf32> -> vector<2x256xf32>
    %cst_27 = arith.constant 0xFF800000 : f32
    %77 = vector.broadcast %cst_27 : f32 to vector<2x32xf32>
    %78 = vector.extract_strided_slice %65 {offsets = [0, 0], sizes = [2, 224], strides = [1, 1]} : vector<2x256xf32> to vector<2x224xf32>
    %79 = tpu.concatenate %77, %78 in 1 : vector<2x32xf32>, vector<2x224xf32> -> vector<2x256xf32>
    %80 = arith.maximumf %76, %79 : vector<2x256xf32>
    %81 = arith.maximumf %73, %80 : vector<2x256xf32>
    %c15_i32_28 = arith.constant 15 : i32
    %82 = vector.broadcast %c15_i32_28 : i32 to vector<2x256xi32>
    %83 = arith.cmpi slt, %33, %82 : vector<2x256xi32>
    %cst_29 = arith.constant 0xFF800000 : f32
    %84 = vector.broadcast %cst_29 : f32 to vector<2x1xf32>
    %85 = vector.extract_strided_slice %81 {offsets = [0, 1], sizes = [2, 255], strides = [1, 1]} : vector<2x256xf32> to vector<2x255xf32>
    %86 = tpu.concatenate %85, %84 in 1 : vector<2x255xf32>, vector<2x1xf32> -> vector<2x256xf32>
    %cst_30 = arith.constant 0xFF800000 : f32
    %87 = vector.broadcast %cst_30 : f32 to vector<2x256xf32>
    %88 = arith.select %83, %86, %87 : vector<2x256xi1>, vector<2x256xf32>
    %c1_i32_31 = arith.constant 1 : i32
    %89 = vector.broadcast %c1_i32_31 : i32 to vector<2x256xi32>
    %90 = arith.cmpi sge, %33, %89 : vector<2x256xi32>
    %cst_32 = arith.constant 0xFF800000 : f32
    %91 = vector.broadcast %cst_32 : f32 to vector<2x1xf32>
    %92 = vector.extract_strided_slice %81 {offsets = [0, 0], sizes = [2, 255], strides = [1, 1]} : vector<2x256xf32> to vector<2x255xf32>
    %93 = tpu.concatenate %91, %92 in 1 : vector<2x1xf32>, vector<2x255xf32> -> vector<2x256xf32>
    %cst_33 = arith.constant 0xFF800000 : f32
    %94 = vector.broadcast %cst_33 : f32 to vector<2x256xf32>
    %95 = arith.select %90, %93, %94 : vector<2x256xi1>, vector<2x256xf32>
    %96 = arith.maximumf %88, %95 : vector<2x256xf32>
    %97 = arith.maximumf %81, %96 : vector<2x256xf32>
    %c14_i32_34 = arith.constant 14 : i32
    %98 = vector.broadcast %c14_i32_34 : i32 to vector<2x256xi32>
    %99 = arith.cmpi slt, %33, %98 : vector<2x256xi32>
    %cst_35 = arith.constant 0xFF800000 : f32
    %100 = vector.broadcast %cst_35 : f32 to vector<2x2xf32>
    %101 = vector.extract_strided_slice %81 {offsets = [0, 2], sizes = [2, 254], strides = [1, 1]} : vector<2x256xf32> to vector<2x254xf32>
    %102 = tpu.concatenate %101, %100 in 1 : vector<2x254xf32>, vector<2x2xf32> -> vector<2x256xf32>
    %cst_36 = arith.constant 0xFF800000 : f32
    %103 = vector.broadcast %cst_36 : f32 to vector<2x256xf32>
    %104 = arith.select %99, %102, %103 : vector<2x256xi1>, vector<2x256xf32>
    %c2_i32_37 = arith.constant 2 : i32
    %105 = vector.broadcast %c2_i32_37 : i32 to vector<2x256xi32>
    %106 = arith.cmpi sge, %33, %105 : vector<2x256xi32>
    %cst_38 = arith.constant 0xFF800000 : f32
    %107 = vector.broadcast %cst_38 : f32 to vector<2x2xf32>
    %108 = vector.extract_strided_slice %81 {offsets = [0, 0], sizes = [2, 254], strides = [1, 1]} : vector<2x256xf32> to vector<2x254xf32>
    %109 = tpu.concatenate %107, %108 in 1 : vector<2x2xf32>, vector<2x254xf32> -> vector<2x256xf32>
    %cst_39 = arith.constant 0xFF800000 : f32
    %110 = vector.broadcast %cst_39 : f32 to vector<2x256xf32>
    %111 = arith.select %106, %109, %110 : vector<2x256xi1>, vector<2x256xf32>
    %112 = arith.maximumf %104, %111 : vector<2x256xf32>
    %113 = arith.maximumf %97, %112 : vector<2x256xf32>
    %cst_40 = arith.constant 0xFF800000 : f32
    %114 = vector.broadcast %cst_40 : f32 to vector<2x16xf32>
    %115 = vector.extract_strided_slice %113 {offsets = [0, 16], sizes = [2, 240], strides = [1, 1]} : vector<2x256xf32> to vector<2x240xf32>
    %116 = tpu.concatenate %115, %114 in 1 : vector<2x240xf32>, vector<2x16xf32> -> vector<2x256xf32>
    %cst_41 = arith.constant 0xFF800000 : f32
    %117 = vector.broadcast %cst_41 : f32 to vector<2x16xf32>
    %118 = vector.extract_strided_slice %113 {offsets = [0, 0], sizes = [2, 240], strides = [1, 1]} : vector<2x256xf32> to vector<2x240xf32>
    %119 = tpu.concatenate %117, %118 in 1 : vector<2x16xf32>, vector<2x240xf32> -> vector<2x256xf32>
    %120 = arith.maximumf %116, %119 : vector<2x256xf32>
    %121 = arith.maximumf %113, %120 : vector<2x256xf32>
    %cst_42 = arith.constant 0xFF800000 : f32
    %122 = vector.broadcast %cst_42 : f32 to vector<2x32xf32>
    %123 = vector.extract_strided_slice %113 {offsets = [0, 32], sizes = [2, 224], strides = [1, 1]} : vector<2x256xf32> to vector<2x224xf32>
    %124 = tpu.concatenate %123, %122 in 1 : vector<2x224xf32>, vector<2x32xf32> -> vector<2x256xf32>
    %cst_43 = arith.constant 0xFF800000 : f32
    %125 = vector.broadcast %cst_43 : f32 to vector<2x32xf32>
    %126 = vector.extract_strided_slice %113 {offsets = [0, 0], sizes = [2, 224], strides = [1, 1]} : vector<2x256xf32> to vector<2x224xf32>
    %127 = tpu.concatenate %125, %126 in 1 : vector<2x32xf32>, vector<2x224xf32> -> vector<2x256xf32>
    %128 = arith.maximumf %124, %127 : vector<2x256xf32>
    %129 = arith.maximumf %121, %128 : vector<2x256xf32>
    %c15_i32_44 = arith.constant 15 : i32
    %130 = vector.broadcast %c15_i32_44 : i32 to vector<2x256xi32>
    %131 = arith.cmpi slt, %33, %130 : vector<2x256xi32>
    %cst_45 = arith.constant 0xFF800000 : f32
    %132 = vector.broadcast %cst_45 : f32 to vector<2x1xf32>
    %133 = vector.extract_strided_slice %129 {offsets = [0, 1], sizes = [2, 255], strides = [1, 1]} : vector<2x256xf32> to vector<2x255xf32>
    %134 = tpu.concatenate %133, %132 in 1 : vector<2x255xf32>, vector<2x1xf32> -> vector<2x256xf32>
    %cst_46 = arith.constant 0xFF800000 : f32
    %135 = vector.broadcast %cst_46 : f32 to vector<2x256xf32>
    %136 = arith.select %131, %134, %135 : vector<2x256xi1>, vector<2x256xf32>
    %c1_i32_47 = arith.constant 1 : i32
    %137 = vector.broadcast %c1_i32_47 : i32 to vector<2x256xi32>
    %138 = arith.cmpi sge, %33, %137 : vector<2x256xi32>
    %cst_48 = arith.constant 0xFF800000 : f32
    %139 = vector.broadcast %cst_48 : f32 to vector<2x1xf32>
    %140 = vector.extract_strided_slice %129 {offsets = [0, 0], sizes = [2, 255], strides = [1, 1]} : vector<2x256xf32> to vector<2x255xf32>
    %141 = tpu.concatenate %139, %140 in 1 : vector<2x1xf32>, vector<2x255xf32> -> vector<2x256xf32>
    %cst_49 = arith.constant 0xFF800000 : f32
    %142 = vector.broadcast %cst_49 : f32 to vector<2x256xf32>
    %143 = arith.select %138, %141, %142 : vector<2x256xi1>, vector<2x256xf32>
    %144 = arith.maximumf %136, %143 : vector<2x256xf32>
    %145 = arith.maximumf %129, %144 : vector<2x256xf32>
    %c14_i32_50 = arith.constant 14 : i32
    %146 = vector.broadcast %c14_i32_50 : i32 to vector<2x256xi32>
    %147 = arith.cmpi slt, %33, %146 : vector<2x256xi32>
    %cst_51 = arith.constant 0xFF800000 : f32
    %148 = vector.broadcast %cst_51 : f32 to vector<2x2xf32>
    %149 = vector.extract_strided_slice %129 {offsets = [0, 2], sizes = [2, 254], strides = [1, 1]} : vector<2x256xf32> to vector<2x254xf32>
    %150 = tpu.concatenate %149, %148 in 1 : vector<2x254xf32>, vector<2x2xf32> -> vector<2x256xf32>
    %cst_52 = arith.constant 0xFF800000 : f32
    %151 = vector.broadcast %cst_52 : f32 to vector<2x256xf32>
    %152 = arith.select %147, %150, %151 : vector<2x256xi1>, vector<2x256xf32>
    %c2_i32_53 = arith.constant 2 : i32
    %153 = vector.broadcast %c2_i32_53 : i32 to vector<2x256xi32>
    %154 = arith.cmpi sge, %33, %153 : vector<2x256xi32>
    %cst_54 = arith.constant 0xFF800000 : f32
    %155 = vector.broadcast %cst_54 : f32 to vector<2x2xf32>
    %156 = vector.extract_strided_slice %129 {offsets = [0, 0], sizes = [2, 254], strides = [1, 1]} : vector<2x256xf32> to vector<2x254xf32>
    %157 = tpu.concatenate %155, %156 in 1 : vector<2x2xf32>, vector<2x254xf32> -> vector<2x256xf32>
    %cst_55 = arith.constant 0xFF800000 : f32
    %158 = vector.broadcast %cst_55 : f32 to vector<2x256xf32>
    %159 = arith.select %154, %157, %158 : vector<2x256xi1>, vector<2x256xf32>
    %160 = arith.maximumf %152, %159 : vector<2x256xf32>
    %161 = arith.maximumf %145, %160 : vector<2x256xf32>
    %cst_56 = arith.constant 0xFF800000 : f32
    %162 = vector.broadcast %cst_56 : f32 to vector<2x16xf32>
    %163 = vector.extract_strided_slice %161 {offsets = [0, 16], sizes = [2, 240], strides = [1, 1]} : vector<2x256xf32> to vector<2x240xf32>
    %164 = tpu.concatenate %163, %162 in 1 : vector<2x240xf32>, vector<2x16xf32> -> vector<2x256xf32>
    %cst_57 = arith.constant 0xFF800000 : f32
    %165 = vector.broadcast %cst_57 : f32 to vector<2x16xf32>
    %166 = vector.extract_strided_slice %161 {offsets = [0, 0], sizes = [2, 240], strides = [1, 1]} : vector<2x256xf32> to vector<2x240xf32>
    %167 = tpu.concatenate %165, %166 in 1 : vector<2x16xf32>, vector<2x240xf32> -> vector<2x256xf32>
    %168 = arith.maximumf %164, %167 : vector<2x256xf32>
    %169 = arith.maximumf %161, %168 : vector<2x256xf32>
    %cst_58 = arith.constant 0xFF800000 : f32
    %170 = vector.broadcast %cst_58 : f32 to vector<2x32xf32>
    %171 = vector.extract_strided_slice %161 {offsets = [0, 32], sizes = [2, 224], strides = [1, 1]} : vector<2x256xf32> to vector<2x224xf32>
    %172 = tpu.concatenate %171, %170 in 1 : vector<2x224xf32>, vector<2x32xf32> -> vector<2x256xf32>
    %cst_59 = arith.constant 0xFF800000 : f32
    %173 = vector.broadcast %cst_59 : f32 to vector<2x32xf32>
    %174 = vector.extract_strided_slice %161 {offsets = [0, 0], sizes = [2, 224], strides = [1, 1]} : vector<2x256xf32> to vector<2x224xf32>
    %175 = tpu.concatenate %173, %174 in 1 : vector<2x32xf32>, vector<2x224xf32> -> vector<2x256xf32>
    %176 = arith.maximumf %172, %175 : vector<2x256xf32>
    %177 = arith.maximumf %169, %176 : vector<2x256xf32>
    %c0_60 = arith.constant 0 : index
    %c0_61 = arith.constant 0 : index
    %c0_62 = arith.constant 0 : index
    %178 = vector.load %arg6[%c0_60, %c0_61, %c0_62] : memref<4x4x2xf32, #tpu.memory_space<vmem>>, vector<4x4x2xf32>
    %c0_63 = arith.constant 0 : index
    %c0_64 = arith.constant 0 : index
    %179 = vector.load %arg10[%c0_63, %c0_64] : memref<4x256xf32, #tpu.memory_space<vmem>>, vector<4x256xf32>
    %180 = vector.extract_strided_slice %178 {offsets = [0, 0, 0], sizes = [1, 4, 2], strides = [1, 1, 1]} : vector<4x4x2xf32> to vector<1x4x2xf32>
    %181 = vector.shape_cast %180 : vector<1x4x2xf32> to vector<4x2xf32>
    %cst_65 = arith.constant dense<0.000000e+00> : vector<4x256xf32>
    %182 = tpu.matmul %181, %16, %cst_65 {dimension_numbers = #tpu.dot_dimension_numbers<[1], [0], [0], [1], [0, 0, 1, 1], [], []>} : vector<4x2xf32>, vector<2x256xf32>, vector<4x256xf32> -> vector<4x256xf32>
    %183 = vector.extract_strided_slice %178 {offsets = [1, 0, 0], sizes = [1, 4, 2], strides = [1, 1, 1]} : vector<4x4x2xf32> to vector<1x4x2xf32>
    %184 = vector.shape_cast %183 : vector<1x4x2xf32> to vector<4x2xf32>
    %cst_66 = arith.constant dense<0.000000e+00> : vector<4x256xf32>
    %185 = tpu.matmul %184, %81, %cst_66 {dimension_numbers = #tpu.dot_dimension_numbers<[1], [0], [0], [1], [0, 0, 1, 1], [], []>} : vector<4x2xf32>, vector<2x256xf32>, vector<4x256xf32> -> vector<4x256xf32>
    %186 = arith.addf %182, %185 : vector<4x256xf32>
    %187 = vector.extract_strided_slice %178 {offsets = [2, 0, 0], sizes = [1, 4, 2], strides = [1, 1, 1]} : vector<4x4x2xf32> to vector<1x4x2xf32>
    %188 = vector.shape_cast %187 : vector<1x4x2xf32> to vector<4x2xf32>
    %cst_67 = arith.constant dense<0.000000e+00> : vector<4x256xf32>
    %189 = tpu.matmul %188, %129, %cst_67 {dimension_numbers = #tpu.dot_dimension_numbers<[1], [0], [0], [1], [0, 0, 1, 1], [], []>} : vector<4x2xf32>, vector<2x256xf32>, vector<4x256xf32> -> vector<4x256xf32>
    %190 = arith.addf %186, %189 : vector<4x256xf32>
    %191 = vector.extract_strided_slice %178 {offsets = [3, 0, 0], sizes = [1, 4, 2], strides = [1, 1, 1]} : vector<4x4x2xf32> to vector<1x4x2xf32>
    %192 = vector.shape_cast %191 : vector<1x4x2xf32> to vector<4x2xf32>
    %cst_68 = arith.constant dense<0.000000e+00> : vector<4x256xf32>
    %193 = tpu.matmul %192, %177, %cst_68 {dimension_numbers = #tpu.dot_dimension_numbers<[1], [0], [0], [1], [0, 0, 1, 1], [], []>} : vector<4x2xf32>, vector<2x256xf32>, vector<4x256xf32> -> vector<4x256xf32>
    %194 = arith.addf %190, %193 : vector<4x256xf32>
    %195 = arith.addf %179, %194 : vector<4x256xf32>
    %c0_69 = arith.constant 0 : index
    %c0_70 = arith.constant 0 : index
    %196 = vector.load %arg10[%c0_69, %c0_70] : memref<4x256xf32, #tpu.memory_space<vmem>>, vector<4x256xf32>
    tpu.vector_store %arg10[%c0_69, %c0_70], %195 {strides = array<i32>} : memref<4x256xf32, #tpu.memory_space<vmem>>, vector<4x256xf32>,
    %c0_i32_71 = arith.constant 0 : i32
    %197 = arith.cmpi eq, %arg1, %c0_i32_71 : i32
    %198 = arith.extui %197 : i1 to i32
    %c0_i32_72 = arith.constant 0 : i32
    %199 = arith.cmpi ne, %198, %c0_i32_72 : i32
    scf.if %199 {
      %c0_73 = arith.constant 0 : index
      %c0_74 = arith.constant 0 : index
      %200 = vector.load %arg10[%c0_73, %c0_74] : memref<4x256xf32, #tpu.memory_space<vmem>>, vector<4x256xf32>
      %c0_75 = arith.constant 0 : index
      %c0_76 = arith.constant 0 : index
      %201 = vector.load %arg7[%c0_75, %c0_76] : memref<4x1xf32, #tpu.memory_space<vmem>>, vector<4x1xf32>
      %202 = vector.broadcast %201 : vector<4x1xf32> to vector<4x256xf32>
      %203 = arith.mulf %200, %202 : vector<4x256xf32>
      %c0_77 = arith.constant 0 : index
      %c0_78 = arith.constant 0 : index
      %204 = vector.load %arg8[%c0_77, %c0_78] : memref<4x1xf32, #tpu.memory_space<vmem>>, vector<4x1xf32>
      %205 = vector.broadcast %204 : vector<4x1xf32> to vector<4x256xf32>
      %206 = arith.addf %203, %205 : vector<4x256xf32>
      %cst_79 = arith.constant 0.000000e+00 : f32
      %207 = vector.broadcast %cst_79 : f32 to vector<4x256xf32>
      %208 = arith.maximumf %206, %207 : vector<4x256xf32>
      %cst_80 = arith.constant 6.000000e+00 : f32
      %209 = vector.broadcast %cst_80 : f32 to vector<4x256xf32>
      %210 = arith.minimumf %208, %209 : vector<4x256xf32>
      %c0_81 = arith.constant 0 : index
      %c0_82 = arith.constant 0 : index
      %c0_83 = arith.constant 0 : index
      %211 = vector.load %arg9[%c0_81, %c0_82, %c0_83] : memref<1x4x256xf32, #tpu.memory_space<vmem>>, vector<1x4x256xf32>
      %212 = vector.shape_cast %211 : vector<1x4x256xf32> to vector<4x256xf32>
      %213 = vector.shape_cast %210 : vector<4x256xf32> to vector<1x4x256xf32>
      tpu.vector_store %arg9[%c0_81, %c0_82, %c0_83], %213 {strides = array<i32>} : memref<1x4x256xf32, #tpu.memory_space<vmem>>, vector<1x4x256xf32>,
    } else {
    }
    return
  }
  func.func @transform_0(%arg0: i32, %arg1: i32) -> (i32, i32, i32) {
    %c0_i32 = arith.constant 0 : i32
    %c0_i32_0 = arith.constant 0 : i32
    %c0_i32_1 = arith.constant 0 : i32
    return %arg0, %c0_i32, %c0_i32_0 : i32, i32, i32
  }
  func.func @transform_1(%arg0: i32, %arg1: i32) -> (i32, i32) {
    %c0_i32 = arith.constant 0 : i32
    %c0_i32_0 = arith.constant 0 : i32
    return %arg1, %c0_i32 : i32, i32
  }
  func.func @transform_2(%arg0: i32, %arg1: i32) -> (i32, i32) {
    %c0_i32 = arith.constant 0 : i32
    %c0_i32_0 = arith.constant 0 : i32
    return %arg1, %c0_i32 : i32, i32
  }
  func.func @transform_3(%arg0: i32, %arg1: i32) -> (i32, i32) {
    %c0_i32 = arith.constant 0 : i32
    %c0_i32_0 = arith.constant 0 : i32
    return %arg1, %c0_i32 : i32, i32
  }
  func.func @transform_4(%arg0: i32, %arg1: i32) -> (i32, i32, i32) {
    %c0_i32 = arith.constant 0 : i32
    %c0_i32_0 = arith.constant 0 : i32
    %c0_i32_1 = arith.constant 0 : i32
    return %c0_i32, %c0_i32_0, %arg1 : i32, i32, i32
  }
  func.func @transform_5(%arg0: i32, %arg1: i32) -> (i32, i32) {
    %c0_i32 = arith.constant 0 : i32
    %c0_i32_0 = arith.constant 0 : i32
    %c0_i32_1 = arith.constant 0 : i32
    return %c0_i32, %c0_i32_0 : i32, i32
  }
  func.func @transform_6(%arg0: i32, %arg1: i32) -> (i32, i32) {
    %c0_i32 = arith.constant 0 : i32
    %c0_i32_0 = arith.constant 0 : i32
    %c0_i32_1 = arith.constant 0 : i32
    return %c0_i32, %c0_i32_0 : i32, i32
  }
  func.func @transform_7(%arg0: i32, %arg1: i32) -> (i32, i32, i32) {
    %c0_i32 = arith.constant 0 : i32
    %c0_i32_0 = arith.constant 0 : i32
    %c0_i32_1 = arith.constant 0 : i32
    return %arg0, %c0_i32, %c0_i32_0 : i32, i32, i32
  }
}

</mosaic_0001>

<bundles_post_ra>
// kernel: tpu_custom_call.1
= control target key start
LH: loop header
LB: loop body
LE: loop exit
PB: predicated region body
PF: predicated region fallthrough
CT: control target
= control target key end

     0   :  { %12 = vsyncpa [#allocation4], 0  ;;  %s1847_s0 = inlined_call_operand.vmem [shape: f32[2,4,256], index: 0, kind: input, shape index: {}]   ;;  %s1848_s1 = inlined_call_operand.vmem [shape: f32[2,4], index: 1, kind: input, shape index: {}]   ;;  %s1849_s2 = inlined_call_operand.vmem [shape: f32[2,1], index: 2, kind: input, shape index: {}]   ;;  %s1850_s3 = inlined_call_operand.vmem [shape: f32[2,1], index: 3, kind: input, shape index: {}]   ;;  %s1851_s4 = inlined_call_operand.vmem [shape: f32[4,4,2], index: 4, kind: input, shape index: {}]   ;;  %s1852_s5 = inlined_call_operand.vmem [shape: f32[4,1], index: 5, kind: input, shape index: {}]   ;;  %s1853_s6 = inlined_call_operand.vmem [shape: f32[4,1], index: 6, kind: input, shape index: {}]   ;;  %s1854_s7 = inlined_call_operand.hbm [shape: f32[2,4,256], index: 7, kind: output, shape index: {}]  }
   0x1   :  { %14 = vsyncpa [#allocation4 + $0x1], 0  ;;  %s1533_s24 = smov 0   ;;  %s1535_s25 = smov 0  }
   0x2   :  { %s1537_s26 = smov 0   ;;  %s1539_s27 = smov 0  }
   0x3   :  { %s1541_s28 = smov 0   ;;  %s1543_s29 = smov 0  }
   0x4 LB: > { %s1292_s30 = sadd.s32 4294967295, %s1479_s29   ;;  %s1293_s8 = sadd.s32 4294967294, %s1479_s29   ;;  %s1479_s29 = sphi %s1543_s29, %s20_s29   ;;  %s1475_s28 = sphi %s1541_s28, %s1866_s28   ;;  %s1471_s27 = sphi %s1539_s27, %s1865_s27   ;;  %s1467_s26 = sphi %s1537_s26, %s1864_s26   ;;  %s1463_s25 = sphi %s1535_s25, %s1863_s25   ;;  %s1459_s24 = sphi %s1533_s24, %s1862_s24  }
   0x5   : > { %s32_s9 = sadd.s32 1, %s1475_s28  ;;  %s211_s10 = sadd.s32 1, %s1467_s26 }
   0x6   : > { %p34_p0 = scmp.ge.s32.totalorder %s32_s9, 2  ;;  %p221_p1 = scmp.ne.s32.totalorder %s1467_s26, %s1463_s25 }
   0x7   : > { %p222_p2 = scmp.eq.s32.totalorder %s1292_s30, 1  ;;  %p227_p3 = scmp.ne.s32.totalorder %s1463_s25, %s1459_s24 }
   0x8   : > { %s1868_s9 = smov (%p34_p0, %s32_s9), 0  ;;  %p228_p5 = scmp.eq.s32.totalorder %s1293_s8, 1 }
   0x9   : > { %p1573_p4 = por %p222_p2, %p221_p1  ;;  %s208_s12 = ssub.s32 %s1475_s28, %s1868_s9 }
   0xa   : > { %p1300_p6 = scmp.ge.s32.totalorder %s1479_s29, 1  ;;  %p209_p7 = scmp.eq.s32.totalorder %s208_s12, 0 }
   0xb   : > { %p1580_p8 = por %p228_p5, %p227_p3  ;;  %p288_p9 = scmp.lt.s32.totalorder %s1479_s29, 3 }
   0xc   : > { %s1586_s14 = scalar_select %p209_p7, %s1467_s26, %s211_s10  }
   0xd   : > { %p289_p10 = pnand %p1300_p6, %p288_p9 }
   0xe   : > { %p336_p11 = scmp.lt.s32.totalorder (!%p289_p10), %s1471_s27, 1  ;;  %v1481_v0 = vmov (!%p289_p10), 0.0   ;;  %v446_v1 = vld [vmem:[%s1849_s2] sm:$0x3] (!%p289_p10)  ;;  %v1482_v2 = vmov (!%p289_p10), 0   ;;  %vm370_vm0 = vcmask (!%p289_p10), 1043456   ;;  %v466_v19 = vlaneseq (!%p289_p10) }
   0xf   : > { %292 = sbr.rel (%p289_p10) target bundleno = 1291 (0x50b), region = 48  ;;  %439 = vmatprep.mubr.f32.mxu0 (!%p289_p10), %v1481_v0  ;;  %940 = vmatprep.mubr.f32.mxu1 (!%p289_p10), %v1481_v0  ;;  %v454_v3 = vld [vmem:[%s1850_s3] sm:$0x3] (!%p289_p10)  ;;  %vm366_vm1 = vcmask (!%p289_p10), 31744   ;;  %vm793_vm2 = vcmask (!%p289_p10), 1041408   ;;  %s1483_s10 = smov (!%p289_p10), 1  }
  0x10   : > { %1398 = vset.pattern.permute.xlu0 (!%p289_p10), %v1482_v2  ;;  %1399 = vset.pattern.permute.xlu1 (!%p289_p10), %v1482_v2  ;;  %v362_v6 = vld [vmem:[%s1848_s1] sm:$0x3] (!%p289_p10)  ;;  %s1484_s12 = smov (!%p289_p10), 127   ;;  %s1485_s15 = smov (!%p289_p10), 126   ;;  %v467_v20 = vand.u32 (!%p289_p10), 127, %v466_v19  ;;  %vm501_vm3 = vcmask (!%p289_p10), 1039360  }
  0x11   : > { %449 = vperm.xlu0 (!%p289_p10), %1398, %v446_v1   ;;  %s1486_s16 = smov (!%p289_p10), 2   ;;  %vm514_vm4 = vcmask (!%p289_p10), 7168   ;;  %vm544_vm7 = vcmask (!%p289_p10), 15360   ;;  %vm531_vm11 = vcmask (!%p289_p10), 1031168   ;;  %s1489_s19 = smov (!%p289_p10), 96   ;;  %vm570_vm15 = vcmask (!%p289_p10), 130048  }
  0x12   : > { %v468_v23 = vadd.s32 (!%p289_p10), 128, %v467_v20  ;;  %v1616_v24 = vand.u32 (!%p289_p10), 15, %v467_v20  ;;  %s1490_s20 = smov (!%p289_p10), 32   ;;  %s1325_s22 = sshll.u32 (!%p289_p10), %s1471_s27, 7 }
  0x14   : > { %vm493_vm5 = vcmp.lt.s32.totalorder (!%p289_p10), %v1616_v24, 15  ;;  %v1620_v28 = vand.u32 (!%p289_p10), 15, %v468_v23  ;;  %vm508_vm6 = vcmp.ge.s32.totalorder (!%p289_p10), %v1616_v24, 1  ;;  %vm538_vm10 = vcmp.ge.s32.totalorder (!%p289_p10), %v1616_v24, 2 }
  0x15   : > { %457 = vperm.xlu0 (!%p289_p10), %1398, %v454_v3   ;;  %vm525_vm12 = vcmp.lt.s32.totalorder (!%p289_p10), %v1616_v24, 14 }
  0x16   : > { %s337_s17 = scalar_select %p336_p11, %s1471_s27, 1  ;;  %vm509_vm8 = vcmp.ge.s32.totalorder %v1620_v28, 1  ;;  %vm1856_vm9 = vcmp.lt.s32.totalorder %v1620_v28, 15  ;;  %vm526_vm13 = vcmp.lt.s32.totalorder %v1620_v28, 14  ;;  %vm1855_vm14 = vcmp.ge.s32.totalorder %v1620_v28, 2 }
  0x17   : > { %s1492_s27 = smov [#allocation3]  }
  0x18   : > { %s1324_s18 = sshll.u32 %s337_s17, 3  ;;  %s1487_s17 = smov 112  }
  0x19   : > { %s340_s23 = scalar_lea.vmem %s1847_s0, %s1324_s18  ;;  %s1488_s18 = smov 16  }
  0x1a   : > { %v363_v4 = vld [vmem:[%s340_s23] sm:$0xff] }
  0x1b   : > { %v365_v5 = vcombine.high %v363_v4, %v363_v4 }
  0x1d   : > { %1304 = vmatprep.subr.msk.mxu0 %vm370_vm0, %v365_v5 }
  0x1e   : > { %1305 = vmatpush1.msk.msra.mxu0 %vm370_vm0, %v363_v4  ;;  %vm561_vm0 = vcmask 916480  }
  0x1f   : > { %1306 = vmatmul.mubr.msk.f32.vlgmr.msra.gmra.mrb[0].mxu0 %vm366_vm1, %v362_v6  ;;  %vm592_vm1 = vcmask 261120  }
  0x20   : > { %862 = vmatprep.mubr.f32.mxu0 %v1481_v0 }
  0x90   : > { %v450_v7 = vpop.permute.xlu0 %449 }
  0x94   : > { %v458_v11 = vpop.permute.xlu0 %457 }
  0xf2   : > { %v441_v8 = vpop.f32.mrb[0].mxu0 }
  0xf3   : > { %v452_v9 = vmul.f32 %v450_v7, %v441_v8  ;;  %v443_v10 = vpop.f32.mrb[1].mxu0 }
  0xf4   : > { %v453_v12 = vmul.f32 %v450_v7, %v443_v10 }
  0xf5   : > { %v460_v13 = vadd.f32 %v458_v11, %v452_v9 }
  0xf6   : > { %v461_v14 = vadd.f32 %v458_v11, %v453_v12 }
  0xf7   : > { %v462_v15 = vmax.f32 %v460_v13, 0.0 }
  0xf8   : > { %v463_v16 = vmax.f32 %v461_v14, 0.0 }
  0xf9   : > { %v464_v17 = vmin.f32 %v462_v15, 6.0 }
  0xfa   : > { %v465_v18 = vmin.f32 %v463_v16, 6.0 }
  0xfb   : > { %510 = vrot.lane.b32.xlu0 %v464_v17, %s1483_s10  ;;  %497 = vrot.lane.b32.xlu1 %v464_v17, %s1484_s12 }
  0xfc   : > { %1310 = vmatprep.subr.msk.mxu1 %vm793_vm2, %v465_v18 }
  0xfd   : > { %1311 = vmatpush1.msk.msra.mxu1 %vm793_vm2, %v464_v17 }
  0xff   : > { %527 = vrot.lane.b32.xlu0 %v464_v17, %s1485_s15  ;;  %499 = vrot.lane.b32.xlu1 %v465_v18, %s1484_s12 }
 0x103   : > { %540 = vrot.lane.b32.xlu0 %v464_v17, %s1486_s16  ;;  %512 = vrot.lane.b32.xlu1 %v465_v18, %s1483_s10 }
 0x107   : > { %529 = vrot.lane.b32.xlu1 %v465_v18, %s1485_s15 }
 0x10b   : > { %542 = vrot.lane.b32.xlu1 %v465_v18, %s1486_s16 }
 0x16d   : > { %v511_v21 = vpop.permute.xlu0 %510  ;;  %v498_v22 = vpop.permute.xlu1 %497 }
 0x16e   : > { %v518_v29 = vsel %vm514_vm4, -inf, %v511_v21 }
 0x16f   : > { %v519_v34 = vsel %vm508_vm6, %v518_v29, -inf }
 0x171   : > { %v528_v25 = vpop.permute.xlu0 %527  ;;  %v500_v26 = vpop.permute.xlu1 %499 }
 0x172   : > { %v502_v27 = vsel %vm501_vm3, %v498_v22, %v500_v26  ;;  %v505_v35 = vsel %vm501_vm3, %v500_v26, -inf }
 0x173   : > { %v506_v30 = vsel %vm493_vm5, %v502_v27, -inf  ;;  %v507_v41 = vsel %vm1856_vm9, %v505_v35, -inf }
 0x174   : > { %v521_v36 = vmax.f32 %v506_v30, %v519_v34 }
 0x175   : > { %v541_v31 = vpop.permute.xlu0 %540  ;;  %v513_v32 = vpop.permute.xlu1 %512 }
 0x176   : > { %v515_v33 = vsel %vm514_vm4, %v511_v21, %v513_v32  ;;  %v548_v37 = vsel %vm544_vm7, -inf, %v541_v31  ;;  %v523_v44 = vmax.f32 %v464_v17, %v521_v36 }
 0x177   : > { %v520_v38 = vsel %vm509_vm8, %v515_v33, -inf  ;;  %v549_v42 = vsel %vm538_vm10, %v548_v37, -inf }
 0x178   : > { %v522_v45 = vmax.f32 %v507_v41, %v520_v38 }
 0x179   : > { %v530_v39 = vpop.permute.xlu1 %529 }
 0x17a   : > { %v532_v40 = vsel %vm531_vm11, %v528_v25, %v530_v39  ;;  %v535_v46 = vsel %vm531_vm11, %v530_v39, -inf  ;;  %v524_v53 = vmax.f32 %v465_v18, %v522_v45 }
 0x17b   : > { %v536_v43 = vsel %vm525_vm12, %v532_v40, -inf  ;;  %v537_v51 = vsel %vm526_vm13, %v535_v46, -inf }
 0x17c   : > { %v551_v47 = vmax.f32 %v536_v43, %v549_v42 }
 0x17d   : > { %v543_v48 = vpop.permute.xlu1 %542 }
 0x17e   : > { %v553_v49 = vmax.f32 %v523_v44, %v551_v47  ;;  %v545_v50 = vsel %vm544_vm7, %v541_v31, %v543_v48 }
 0x17f   : > { %v550_v52 = vsel %vm1855_vm14, %v545_v50, -inf  ;;  %vm583_vm14 = vcmask 785408  }
 0x180   : > { %v552_v54 = vmax.f32 %v537_v51, %v550_v52  ;;  %557 = vrot.lane.b32.xlu0 %v553_v49, %s1487_s17  ;;  %v785_v52 = vld [vmem:[%s1851_s4] sm:$0xf] }
 0x181   : > { %1312 = vmatmul.mubr.msk.f32.vlgmr.msra.gmra.mrb[0].mxu1 %vm544_vm7, %v785_v52 }
 0x182   : > { %v554_v55 = vmax.f32 %v524_v53, %v552_v54  ;;  %1018 = vmatprep.mubr.f32.mxu1 %v1481_v0 }
 0x184   : > { %566 = vrot.lane.b32.xlu0 %v553_v49, %s1488_s18  ;;  %559 = vrot.lane.b32.xlu1 %v554_v55, %s1487_s17 }
 0x188   : > { %579 = vrot.lane.b32.xlu0 %v553_v49, %s1489_s19  ;;  %568 = vrot.lane.b32.xlu1 %v554_v55, %s1488_s18 }
 0x18c   : > { %588 = vrot.lane.b32.xlu0 %v553_v49, %s1490_s20  ;;  %581 = vrot.lane.b32.xlu1 %v554_v55, %s1489_s19 }
 0x190   : > { %590 = vrot.lane.b32.xlu1 %v554_v55, %s1490_s20 }
 0x1f2   : > { %v558_v56 = vpop.permute.xlu0 %557 }
 0x1f6   : > { %v567_v57 = vpop.permute.xlu0 %566  ;;  %v560_v58 = vpop.permute.xlu1 %559 }
 0x1f7   : > { %v574_v59 = vsel %vm570_vm15, -inf, %v567_v57  ;;  %v562_v60 = vsel %vm561_vm0, %v558_v56, %v560_v58  ;;  %v565_v4 = vsel %vm561_vm0, %v560_v58, -inf }
 0x1f8   : > { %v575_v63 = vmax.f32 %v562_v60, %v574_v59 }
 0x1fa   : > { %v580_v61 = vpop.permute.xlu0 %579  ;;  %v569_v62 = vpop.permute.xlu1 %568  ;;  %v577_v7 = vmax.f32 %v553_v49, %v575_v63 }
 0x1fb   : > { %v571_v1 = vsel %vm570_vm15, %v567_v57, %v569_v62 }
 0x1fc   : > { %v576_v8 = vmax.f32 %v565_v4, %v571_v1 }
 0x1fe   : > { %v589_v2 = vpop.permute.xlu0 %588  ;;  %v582_v3 = vpop.permute.xlu1 %581  ;;  %v578_v14 = vmax.f32 %v554_v55, %v576_v8 }
 0x1ff   : > { %v596_v5 = vsel %vm592_vm1, -inf, %v589_v2  ;;  %v584_v6 = vsel %vm583_vm14, %v580_v61, %v582_v3  ;;  %v587_v12 = vsel %vm583_vm14, %v582_v3, -inf }
 0x200   : > { %v597_v9 = vmax.f32 %v584_v6, %v596_v5 }
 0x202   : > { %v599_v10 = vmax.f32 %v577_v7, %v597_v9  ;;  %v591_v11 = vpop.permute.xlu1 %590 }
 0x203   : > { %v593_v13 = vsel %vm592_vm1, %v589_v2, %v591_v11 }
 0x204   : > { %v598_v15 = vmax.f32 %v587_v12, %v593_v13  ;;  %603 = vrot.lane.b32.xlu0 %v599_v10, %s1484_s12 }
 0x206   : > { %v600_v16 = vmax.f32 %v578_v14, %v598_v15 }
 0x208   : > { %613 = vrot.lane.b32.xlu0 %v599_v10, %s1483_s10  ;;  %605 = vrot.lane.b32.xlu1 %v600_v16, %s1484_s12 }
 0x209   : > { %1307 = vmatprep.subr.msk.mxu0 %vm793_vm2, %v600_v16 }
 0x20a   : > { %1308 = vmatpush1.msk.msra.mxu0 %vm793_vm2, %v599_v10 }
 0x20c   : > { %627 = vrot.lane.b32.xlu0 %v599_v10, %s1485_s15  ;;  %615 = vrot.lane.b32.xlu1 %v600_v16, %s1483_s10 }
 0x210   : > { %637 = vrot.lane.b32.xlu0 %v599_v10, %s1486_s16  ;;  %629 = vrot.lane.b32.xlu1 %v600_v16, %s1485_s15 }
 0x214   : > { %639 = vrot.lane.b32.xlu1 %v600_v16, %s1486_s16 }
 0x276   : > { %v604_v17 = vpop.permute.xlu0 %603 }
 0x27a   : > { %v614_v18 = vpop.permute.xlu0 %613  ;;  %v606_v20 = vpop.permute.xlu1 %605 }
 0x27b   : > { %v620_v21 = vsel %vm514_vm4, -inf, %v614_v18  ;;  %v607_v22 = vsel %vm501_vm3, %v604_v17, %v606_v20  ;;  %v610_v30 = vsel %vm501_vm3, %v606_v20, -inf }
 0x27c   : > { %v621_v23 = vsel %vm508_vm6, %v620_v21, -inf  ;;  %v611_v25 = vsel %vm493_vm5, %v607_v22, -inf  ;;  %v612_v37 = vsel %vm1856_vm9, %v610_v30, -inf  ;;  %vm1859_vm9 = vcmp.ge.s32.totalorder %v1620_v28, 2 }
 0x27d   : > { %v623_v31 = vmax.f32 %v611_v25, %v621_v23 }
 0x27e   : > { %v628_v26 = vpop.permute.xlu0 %627  ;;  %v616_v27 = vpop.permute.xlu1 %615 }
 0x27f   : > { %v617_v29 = vsel %vm514_vm4, %v614_v18, %v616_v27  ;;  %v625_v40 = vmax.f32 %v599_v10, %v623_v31 }
 0x280   : > { %v622_v32 = vsel %vm509_vm8, %v617_v29, -inf }
 0x281   : > { %v624_v41 = vmax.f32 %v612_v37, %v622_v32 }
 0x282   : > { %v638_v33 = vpop.permute.xlu0 %637  ;;  %v630_v34 = vpop.permute.xlu1 %629 }
 0x283   : > { %v644_v35 = vsel %vm544_vm7, -inf, %v638_v33  ;;  %v631_v36 = vsel %vm531_vm11, %v628_v26, %v630_v34  ;;  %v634_v42 = vsel %vm531_vm11, %v630_v34, -inf  ;;  %v626_v49 = vmax.f32 %v600_v16, %v624_v41 }
 0x284   : > { %v645_v38 = vsel %vm538_vm10, %v644_v35, -inf  ;;  %v635_v39 = vsel %vm525_vm12, %v631_v36, -inf  ;;  %v636_v47 = vsel %vm526_vm13, %v634_v42, -inf }
 0x285   : > { %v647_v43 = vmax.f32 %v635_v39, %v645_v38 }
 0x286   : > { %v640_v44 = vpop.permute.xlu1 %639 }
 0x287   : > { %v649_v45 = vmax.f32 %v625_v40, %v647_v43  ;;  %v641_v46 = vsel %vm544_vm7, %v638_v33, %v640_v44 }
 0x288   : > { %v646_v48 = vsel %vm1859_vm9, %v641_v46, -inf }
 0x289   : > { %v648_v50 = vmax.f32 %v636_v47, %v646_v48  ;;  %653 = vrot.lane.b32.xlu0 %v649_v45, %s1487_s17  ;;  %v787_v48 = vld [vmem:[%s1851_s4 + $0x8] sm:$0xf] }
 0x28b   : > { %v650_v51 = vmax.f32 %v626_v49, %v648_v50  ;;  %v1133_v49 = vld [vmem:[%s1853_s6] sm:$0xf] }
 0x28d   : > { %661 = vrot.lane.b32.xlu0 %v649_v45, %s1488_s18  ;;  %655 = vrot.lane.b32.xlu1 %v650_v51, %s1487_s17 }
 0x291   : > { %673 = vrot.lane.b32.xlu0 %v649_v45, %s1489_s19  ;;  %663 = vrot.lane.b32.xlu1 %v650_v51, %s1488_s18 }
 0x295   : > { %681 = vrot.lane.b32.xlu0 %v649_v45, %s1490_s20  ;;  %675 = vrot.lane.b32.xlu1 %v650_v51, %s1489_s19 }
 0x299   : > { %683 = vrot.lane.b32.xlu1 %v650_v51, %s1490_s20 }
 0x2fb   : > { %v654_v53 = vpop.permute.xlu0 %653 }
 0x2ff   : > { %v662_v54 = vpop.permute.xlu0 %661  ;;  %v656_v55 = vpop.permute.xlu1 %655 }
 0x300   : > { %v668_v56 = vsel %vm570_vm15, -inf, %v662_v54  ;;  %v657_v57 = vsel %vm561_vm0, %v654_v53, %v656_v55  ;;  %v660_v1 = vsel %vm561_vm0, %v656_v55, -inf }
 0x301   : > { %v669_v60 = vmax.f32 %v657_v57, %v668_v56 }
 0x303   : > { %v674_v58 = vpop.permute.xlu0 %673  ;;  %v664_v59 = vpop.permute.xlu1 %663  ;;  %v671_v4 = vmax.f32 %v649_v45, %v669_v60 }
 0x304   : > { %v665_v61 = vsel %vm570_vm15, %v662_v54, %v664_v59 }
 0x305   : > { %v670_v5 = vmax.f32 %v660_v1, %v665_v61 }
 0x307   : > { %v682_v62 = vpop.permute.xlu0 %681  ;;  %v676_v63 = vpop.permute.xlu1 %675  ;;  %v672_v11 = vmax.f32 %v650_v51, %v670_v5 }
 0x308   : > { %v688_v2 = vsel %vm592_vm1, -inf, %v682_v62  ;;  %v677_v3 = vsel %vm583_vm14, %v674_v58, %v676_v63  ;;  %v680_v9 = vsel %vm583_vm14, %v676_v63, -inf }
 0x309   : > { %v689_v6 = vmax.f32 %v677_v3, %v688_v2 }
 0x30b   : > { %v691_v7 = vmax.f32 %v671_v4, %v689_v6  ;;  %v684_v8 = vpop.permute.xlu1 %683 }
 0x30c   : > { %v685_v10 = vsel %vm592_vm1, %v682_v62, %v684_v8 }
 0x30d   : > { %v690_v12 = vmax.f32 %v680_v9, %v685_v10  ;;  %695 = vrot.lane.b32.xlu0 %v691_v7, %s1484_s12 }
 0x30f   : > { %v692_v13 = vmax.f32 %v672_v11, %v690_v12  ;;  %v788_v11 = vld [vmem:[%s1851_s4 + $0xc] sm:$0xf] }
 0x311   : > { %705 = vrot.lane.b32.xlu0 %v691_v7, %s1483_s10  ;;  %697 = vrot.lane.b32.xlu1 %v692_v13, %s1484_s12  ;;  %s1800_s12 = scalar_lea.hbm %s1854_s7, %s1325_s22 }
 0x312   : > { %1313 = vmatprep.subr.msk.mxu1 %vm793_vm2, %v692_v13 }
 0x313   : > { %1314 = vmatpush1.msk.msra.mxu1 %vm793_vm2, %v691_v7 }
 0x314   : > { %1315 = vmatmul.mubr.msk.f32.vlgmr.msra.gmra.mrb[0].mxu1 %vm544_vm7, %v787_v48 }
 0x315   : > { %719 = vrot.lane.b32.xlu0 %v691_v7, %s1485_s15  ;;  %707 = vrot.lane.b32.xlu1 %v692_v13, %s1483_s10 }
 0x316   : > { %1100 = vmatprep.mubr.f32.mxu1 %v1481_v0  ;;  %v1119_v0 = vld [vmem:[%s1852_s5] sm:$0xf] }
 0x319   : > { %729 = vrot.lane.b32.xlu0 %v691_v7, %s1486_s16  ;;  %721 = vrot.lane.b32.xlu1 %v692_v13, %s1485_s15 }
 0x31d   : > { %731 = vrot.lane.b32.xlu1 %v692_v13, %s1486_s16 }
 0x37f   : > { %v696_v14 = vpop.permute.xlu0 %695 }
 0x383   : > { %v706_v15 = vpop.permute.xlu0 %705  ;;  %v698_v16 = vpop.permute.xlu1 %697 }
 0x384   : > { %v712_v17 = vsel %vm514_vm4, -inf, %v706_v15  ;;  %v699_v18 = vsel %vm501_vm3, %v696_v14, %v698_v16  ;;  %v702_v26 = vsel %vm501_vm3, %v698_v16, -inf  ;;  %vm1861_vm3 = vmmov %vm1859_vm9  ;;  %v1491_v14 = vmov 839922192  }
 0x385   : > { %v713_v20 = vsel %vm508_vm6, %v712_v17, -inf  ;;  %v703_v21 = vsel %vm493_vm5, %v699_v18, -inf  ;;  %vm1860_vm6 = vcmp.lt.s32.totalorder %v1620_v28, 15  ;;  %v786_v28 = vld [vmem:[%s1851_s4 + $0x4] sm:$0xf]  ;;  %v1128_v17 = vshrl.u32 %v466_v19, 7 }
 0x386   : > { %v715_v27 = vmax.f32 %v703_v21, %v713_v20  ;;  %v704_v34 = vsel %vm1860_vm6, %v702_v26, -inf  ;;  %1309 = vmatmul.mubr.msk.f32.vlgmr.msra.gmra.mrb[2].mxu0 %vm544_vm7, %v786_v28 }
 0x387   : > { %v720_v22 = vpop.permute.xlu0 %719  ;;  %v708_v23 = vpop.permute.xlu1 %707 }
 0x388   : > { %v709_v25 = vsel %vm514_vm4, %v706_v15, %v708_v23  ;;  %v717_v37 = vmax.f32 %v691_v7, %v715_v27  ;;  %v1125_v15 = vunpack.c.l.s4 %v1491_v14 }
 0x389   : > { %v714_v29 = vsel %vm509_vm8, %v709_v25, -inf }
 0x38a   : > { %v716_v38 = vmax.f32 %v704_v34, %v714_v29  ;;  %v1126_v16 = vunpack.c.0.s8 %v1125_v15 }
 0x38b   : > { %v730_v30 = vpop.permute.xlu0 %729  ;;  %v722_v31 = vpop.permute.xlu1 %721 }
 0x38c   : > { %v736_v32 = vsel %vm544_vm7, -inf, %v730_v30  ;;  %v723_v33 = vsel %vm531_vm11, %v720_v22, %v722_v31  ;;  %v726_v39 = vsel %vm531_vm11, %v722_v31, -inf  ;;  %v718_v46 = vmax.f32 %v692_v13, %v716_v38 }
 0x38d   : > { %v737_v35 = vsel %vm538_vm10, %v736_v32, -inf  ;;  %v727_v36 = vsel %vm525_vm12, %v723_v33, -inf  ;;  %v728_v44 = vsel %vm526_vm13, %v726_v39, -inf  ;;  %v1129_v18 = vsub.s32 %v1126_v16, %v1128_v17 }
 0x38e   : > { %v739_v40 = vmax.f32 %v727_v36, %v737_v35 }
 0x38f   : > { %v732_v41 = vpop.permute.xlu1 %731 }
 0x390   : > { %v741_v42 = vmax.f32 %v717_v37, %v739_v40  ;;  %v733_v43 = vsel %vm544_vm7, %v730_v30, %v732_v41 }
 0x391   : > { %v738_v45 = vsel %vm1861_vm3, %v733_v43, -inf }
 0x392   : > { %v740_v47 = vmax.f32 %v728_v44, %v738_v45  ;;  %753 = vrot.lane.b32.xlu1 %v741_v42, %s1488_s18 }
 0x394   : > { %v742_v24 = vmax.f32 %v718_v46, %v740_v47 }
 0x396   : > { %745 = vrot.lane.b32.xlu1 %v741_v42, %s1487_s17  ;;  %747 = vrot.lane.b32.xlu0 %v742_v24, %s1487_s17  ;;  %s1405_s17 = sshll.u32 %s1492_s27, 4  ;;  %s1406_s17 = int_to_ptr.vmem [resolvable:$false] %s1405_s17 }
 0x39a   : > { %773 = vrot.lane.b32.xlu1 %v741_v42, %s1490_s20  ;;  %755 = vrot.lane.b32.xlu0 %v742_v24, %s1488_s18  ;;  %s1407_s18 = scalar_lea.vmem %s1406_s17, 256 }
 0x39e   : > { %765 = vrot.lane.b32.xlu1 %v741_v42, %s1489_s19  ;;  %767 = vrot.lane.b32.xlu0 %v742_v24, %s1489_s19 }
 0x3a2   : > { %775 = vrot.lane.b32.xlu0 %v742_v24, %s1490_s20  ;;  %1136 = vperm.xlu1 %1399, %v1133_v49   ;;  %s333_s20 = sand.u32 1, %s1463_s25  }
 0x3a3   : > { %s1301_s21 = sshll.u32 %s333_s20, 3  ;;  %s1151_s15 = scalar_lea.sflag [#allocation4], %s333_s20 }
 0x3a4   : > { %s335_s23 = scalar_lea.vmem [#allocation3], %s1301_s21 }
 0x3a5   : > { %s1165_s30 = sshll.u32 %s335_s23, 4  ;;  %s1802_s30 = int_to_ptr.vmem [resolvable:$true] %s1165_s30 }
 0x3a6   : > { %1122 = vperm.xlu0 %1398, %v1119_v0   ;;  %s1401_s16 = scalar_lea.vmem %s1802_s30, 128  ;;  %p1408_p1 = scmp.lt.s32.totalorder %s1802_s30, %s1406_s17 }
 0x3a7   : > { %p1402_p12 = scmp.ne.s32.totalorder %s1802_s30, %s1401_s16  ;;  %p1409_p2 = scmp.lt.s32.totalorder %s1407_s18, %s1401_s16 }
 0x3a9   : > { %p1403_p13 = pnand %p1402_p12, %p1573_p4  ;;  %p1410_p3 = por %p1409_p2, %p1408_p1 }
 0x3ab   : > { %p1404_p0 = pneg %p1403_p13 }
 0x3ad   : > { %p1411_p5 = pnand %p1410_p3, %p1404_p0 }
 0x404   : > { %v754_v50 = vpop.permute.xlu1 %753 }
 0x405   : > { %v760_v60 = vsel %vm570_vm15, -inf, %v754_v50 }
 0x408   : > { %v748_v51 = vpop.permute.xlu0 %747  ;;  %v746_v52 = vpop.permute.xlu1 %745 }
 0x409   : > { %v749_v56 = vsel %vm561_vm0, %v746_v52, %v748_v51  ;;  %v752_v59 = vsel %vm561_vm0, %v748_v51, -inf }
 0x40a   : > { %v761_v63 = vmax.f32 %v749_v56, %v760_v60 }
 0x40c   : > { %v756_v53 = vpop.permute.xlu0 %755  ;;  %v774_v54 = vpop.permute.xlu1 %773  ;;  %v763_v8 = vmax.f32 %v741_v42, %v761_v63 }
 0x40d   : > { %v757_v55 = vsel %vm570_vm15, %v754_v50, %v756_v53  ;;  %v780_v1 = vsel %vm592_vm1, -inf, %v774_v54 }
 0x40e   : > { %v762_v61 = vmax.f32 %v752_v59, %v757_v55 }
 0x410   : > { %v768_v57 = vpop.permute.xlu0 %767  ;;  %v766_v58 = vpop.permute.xlu1 %765  ;;  %v764_v6 = vmax.f32 %v742_v24, %v762_v61 }
 0x411   : > { %v769_v62 = vsel %vm583_vm14, %v766_v58, %v768_v57  ;;  %v772_v3 = vsel %vm583_vm14, %v768_v57, -inf }
 0x412   : > { %v781_v4 = vmax.f32 %v769_v62, %v780_v1 }
 0x414   : > { %v776_v2 = vpop.permute.xlu0 %775  ;;  %v783_v10 = vmax.f32 %v763_v8, %v781_v4 }
 0x415   : > { %v777_v5 = vsel %vm592_vm1, %v774_v54, %v776_v2 }
 0x416   : > { %v782_v7 = vmax.f32 %v772_v3, %v777_v5 }
 0x418   : > { %v784_v9 = vmax.f32 %v764_v6, %v782_v7 }
 0x41a   : > { %1316 = vmatprep.subr.msk.mxu1 %vm793_vm2, %v784_v9 }
 0x41b   : > { %1317 = vmatpush1.msk.msra.mxu1 %vm793_vm2, %v783_v10 }
 0x41c   : > { %1318 = vmatmul.mubr.msk.f32.vlgmr.msra.gmra.mrb[0].mxu1 %vm544_vm7, %v788_v11 }
 0x421   : > { %v1137_v25 = vpop.permute.xlu1 %1136 }
 0x422   : > { %v1144_v30 = vrot.slane %v1137_v25, %v1129_v18 }
 0x425   : > { %v1123_v20 = vpop.permute.xlu0 %1122 }
 0x426   : > { %v1130_v27 = vrot.slane %v1123_v20, %v1129_v18 }
 0x459   : > { %v864_v12 = vpop.f32.mrb[2].mxu0 }
 0x45a   : > { %v866_v13 = vpop.f32.mrb[3].mxu0 }
 0x4ef   : > { %v1102_v21 = vpop.f32.mrb[0].mxu1 }
 0x4f0   : > { %v1326_v22 = vadd.f32 %v1102_v21, %v864_v12  ;;  %v1104_v23 = vpop.f32.mrb[1].mxu1 }
 0x4f1   : > { %v1327_v26 = vadd.f32 %v1104_v23, %v866_v13 }
 0x4f3   : > { %v1111_v29 = vcombine.low %v1326_v22, %v1327_v26 }
 0x4f5   : > { %v1132_v31 = vmul.f32 %v1130_v27, %v1111_v29 }
 0x4f7   : > { %v1146_v32 = vadd.f32 %v1144_v30, %v1132_v31 }
 0x4f9   : > { %v1147_v33 = vmax.f32 %v1146_v32, 0.0 }
 0x4fb   : > { %v1148_v19 = vmin.f32 %v1147_v33, 6.0 }
 0x4fd   : > { %1149 = vst [vmem:[%s335_s23] sm:$0xff] %v1148_v19 }
 0x4fe   : > { %1414 = shalt.err (!%p1411_p5)
}
 0x4ff   : > { %s1415_s19 = scalar_lea.hbm %s1800_s12, 128  ;;  %s1419_s22 = scalar_lea.hbm %s1854_s7, 256 }
 0x500   : > { %p1416_p6 = scmp.ne.s32.totalorder %s1800_s12, %s1415_s19  ;;  %p1420_p10 = scmp.lt.u32.totalorder %s1800_s12, %s1854_s7 }
 0x501   : > { %p1421_p11 = scmp.lt.u32.totalorder %s1419_s22, %s1415_s19  ;;  %p1423_p13 = scmp.lt.u32.totalorder %s1415_s19, %s1800_s12 }
 0x502   : > { %p1417_p7 = pnand %p1416_p6, %p1573_p4 }
 0x503   : > { %p1422_p12 = por %p1421_p11, %p1420_p10 }
 0x504   : > { %p1418_p9 = pneg %p1417_p7 }
 0x505   : > { %p1424_p0 = por %p1423_p13, %p1422_p12 }
 0x507   : > { %p1425_p1 = pnand %p1424_p0, %p1418_p9 }
 0x509   : > { %1428 = shalt.err (!%p1425_p1)
}
 0x50a   : > { %1332 = dma.vmem_to_hbm [thread:$0]  (%p1573_p4), %s1802_s30, 128, %s1800_s12, %s1151_s15  }
 0x50b PF: > { %p1338_p2 = scmp.ge.s32.totalorder %s1479_s29, 2  ;;  %s1177_s10 = sand.u32 1, %s1459_s24  }
 0x50c   : > { %s1178_s16 = scalar_lea.sflag [#allocation4], %s1177_s10 }
 0x50d   : > { %p1335_p3 = pnand %p1338_p2, %p1580_p8 }
 0x50f   : > { %1454 = dma.done.wait (!%p1335_p3), %s1178_s16, 128  }
 0x510   : > { %1456 = vsyncadd (!%p1335_p3), %s1178_s16, 4294967168  ;;  %s20_s29 = sadd.s32 1, %s1479_s29   ;;  %s1862_s24 = smov %s1463_s25 }
 0x511   : > { %p17_p5 = scmp.ge.s32.totalorder %s20_s29, 4   ;;  %s1863_s25 = smov %s1467_s26 }
 0x512   : > { %s1864_s26 = smov %s1586_s14  ;;  %s1865_s27 = smov %s1475_s28 }
 0x513   : > { %s1866_s28 = smov %s1868_s9  ;;  %19 = sbr.rel (!%p17_p5) target bundleno = 4 (0x4), region = 103 }
 0x51a   :  { %1183 = vsyncpa [#allocation4], 1 }
 0x51b   :  { %1185 = vsyncpa [#allocation4 + $0x1], 1 }

</bundles_post_ra>
